<compile_context>
chip_gen: v6e
topology: v6e:2x2x1
jax: 0.10.0
libtpu: 0.0.40
codegen_flags: <defaults>
</compile_context>

<pallas_src>
import functools

import jax
import jax.numpy as jnp
from jax import lax
from jax.experimental import pallas as pl
from jax.experimental.pallas import tpu as pltpu


def _round_up(x, m):
    return (x + m - 1) // m * m


def _critic_kernel(xa_ref, w1t_ref, b1_ref, w2t_ref, b2_ref, w3r_ref, b3_ref,
                   o_ref, *, l1_size):
    l1p = w1t_ref.shape[1]

    # ---- layer 1 + action passthrough (bf16 MXU, f32 acc) -----------------
    # w1t is extended with an identity block, so this single matmul both
    # computes x @ W1^T (cols [0, l1)) and copies `a` into cols [l1, l1+act).
    h1 = jnp.dot(xa_ref[...].astype(jnp.bfloat16), w1t_ref[...],
                 preferred_element_type=jnp.float32) + b1_ref[...]
    lane = lax.broadcasted_iota(jnp.int32, (1, l1p), 1)
    # ReLU only the true h1 lanes; action lanes pass through unclipped.
    h1 = jnp.where(lane < l1_size, jnp.maximum(h1, 0.0), h1)

    # ---- layer 2: W2_a is folded into rows [l1, l1+act) of w2t -------------
    h2 = jnp.dot(h1.astype(jnp.bfloat16), w2t_ref[...],
                 preferred_element_type=jnp.float32) + b2_ref[...]
    h2 = jnp.maximum(h2, 0.0)

    # ---- layer 3 (N=1): VPU multiply + XLU lane reduction ------------------
    q = jnp.sum(h2 * w3r_ref[...], axis=-1, keepdims=True) + b3_ref[...]
    o_ref[...] = q.astype(o_ref.dtype)


def critic_forward(x, a, params, *, block_b=1024):
    w1t, b1, w2t = params["w1t"], params["b1"], params["w2t"]
    b2, w3r, b3 = params["b2"], params["w3r"], params["b3"]
    l1_size = params["l1_size"]

    B, obs = x.shape
    act = a.shape[1]
    in_w = obs + act
    assert w1t.shape[0] == in_w
    l1p = w1t.shape[1]
    l2p = w2t.shape[1]

    # Fuse x and a into one input block (one DMA per grid step).
    xa = jnp.concatenate([x, a], axis=1).astype(jnp.float32)

    # Batch block: full padded batch when small (amortize per-step overhead),
    # but >= 2 grid steps for B >= 512 so v7x's two TensorCores both get work.
    # Cap at block_b (default 1024) to stay well inside v5e's 16 MiB scoped VMEM.
    B8 = _round_up(B, 8)
    if B8 >= 512:
        bb = min(block_b, _round_up((B8 + 1) // 2, 8))
    else:
        bb = min(block_b, B8)
    B_pad = _round_up(B8, bb)
    if B_pad != B:
        xa = jnp.pad(xa, ((0, B_pad - B), (0, 0)))
    grid = (B_pad // bb,)

    def batch_spec(shape):
        return pl.BlockSpec(shape, lambda i: (i, 0))

    def const_spec(shape):
        return pl.BlockSpec(shape, lambda i: (0, 0))

    flops = 2 * B_pad * (in_w * l1p + l1p * l2p + l2p)
    bytes_accessed = (xa.size * 4 + B_pad * 4
                      + w1t.size * 2 + w2t.size * 2
                      + (b1.size + b2.size + w3r.size + b3.size) * 4)

    out = pl.pallas_call(
        functools.partial(_critic_kernel, l1_size=l1_size),
        out_shape=jax.ShapeDtypeStruct((B_pad, 1), jnp.float32),
        grid=grid,
        in_specs=[
            batch_spec((bb, in_w)),    # fused [x, a]
            const_spec((in_w, l1p)),   # w1t extended w/ identity (bf16)
            const_spec((1, l1p)),      # b1 (f32)
            const_spec((l1p, l2p)),    # w2t with W2_a folded in (bf16)
            const_spec((1, l2p)),      # b2 (f32)
            const_spec((1, l2p)),      # w3 row (f32, VPU)
            const_spec((1, 1)),        # b3
        ],
        out_specs=batch_spec((bb, 1)),
        compiler_params=pltpu.CompilerParams(
            dimension_semantics=("parallel",)),
        cost_estimate=pl.CostEstimate(
            flops=flops, transcendentals=0, bytes_accessed=bytes_accessed),
    )(xa, w1t, b1, w2t, b2, w3r, b3)
    # Zero-padded batch rows compute (discarded) bias-driven q values; slice off.
    return out[:B]


def init_critic_params(key, obs_size, action_size, l1_size=400, l2_size=300):
    """Init matching the PyTorch module; returns (kernel params, raw weights)."""
    k1, k2, k3, k4, k5, k6 = jax.random.split(key, 6)
    f1 = 1.0 / jnp.sqrt(float(l1_size))
    f2 = 1.0 / jnp.sqrt(float(l2_size))
    f3 = 0.0003

    # PyTorch layer weights are (out, in); init bounds use weight.size()[0].
    w1 = jax.random.uniform(k1, (l1_size, obs_size), jnp.float32, -f1, f1)
    b1 = jax.random.uniform(k2, (1, l1_size), jnp.float32, -f1, f1)
    w2 = jax.random.uniform(k3, (l2_size, l1_size + action_size), jnp.float32, -f2, f2)
    b2 = jax.random.uniform(k4, (1, l2_size), jnp.float32, -f2, f2)
    w3 = jax.random.uniform(k5, (1, l2_size), jnp.float32, -f3, f3)
    b3 = jax.random.uniform(k6, (1, 1), jnp.float32, -f3, f3)

    # Pad l1 so the action lanes fit inside the padded hidden width.
    l1p = _round_up(l1_size + action_size, 128)   # 400+4 -> 512
    l2p = _round_up(l2_size, 128)                 # 300   -> 384
    assert l1_size + action_size <= l1p

    # Layer-1 weight, extended with an identity block so the same MXU pass
    # copies `a` into h1's padded lanes [l1_size, l1_size+action_size).
    w1t = jnp.zeros((obs_size + action_size, l1p), jnp.float32)
    w1t = w1t.at[:obs_size, :l1_size].set(w1.T)
    w1t = w1t.at[obs_size:, l1_size:l1_size + action_size].set(
        jnp.eye(action_size, dtype=jnp.float32))
    b1p = jnp.zeros((1, l1p), jnp.float32).at[:, :l1_size].set(b1)

    # Layer-2 weight: h1 part in rows [0, l1_size); W2_a folded into rows
    # [l1_size, l1_size+action_size); remaining padded rows/cols stay zero.
    w2t = jnp.zeros((l1p, l2p), jnp.float32)
    w2t = w2t.at[:l1_size, :l2_size].set(w2[:, :l1_size].T)
    w2t = w2t.at[l1_size:l1_size + action_size, :l2_size].set(w2[:, l1_size:].T)
    b2p = jnp.zeros((1, l2p), jnp.float32).at[:, :l2_size].set(b2)

    w3r = jnp.zeros((1, l2p), jnp.float32).at[:, :l2_size].set(w3)

    # MXU operands stored as bf16 once (halves weight DMA); VPU operands f32.
    params = dict(w1t=w1t.astype(jnp.bfloat16), b1=b1p,
                  w2t=w2t.astype(jnp.bfloat16), b2=b2p,
                  w3r=w3r, b3=b3, l1_size=l1_size)
    raw = (w1, b1, w2, b2, w3, b3)
    return params, raw


def critic_reference_mimic(x, a, params):
    """Pure-JAX reference replicating the kernel's bf16-MXU / f32-epilogue math."""
    w1t, b1, w2t = params["w1t"], params["b1"], params["w2t"]
    b2, w3r, b3 = params["b2"], params["w3r"], params["b3"]
    l1_size = params["l1_size"]
    l1p = w1t.shape[1]
    xa = jnp.concatenate([x, a], axis=1)
    h1 = jnp.dot(xa.astype(jnp.bfloat16), w1t,
                 preferred_element_type=jnp.float32) + b1
    lane = jnp.arange(l1p)[None, :]
    h1 = jnp.where(lane < l1_size, jnp.maximum(h1, 0.0), h1)
    h2 = jnp.maximum(
        jnp.dot(h1.astype(jnp.bfloat16), w2t,
                preferred_element_type=jnp.float32) + b2, 0.0)
    return jnp.sum(h2 * w3r, axis=-1, keepdims=True) + b3


def critic_reference_f32(x, a, raw):
    """Full-precision reference matching the PyTorch module exactly."""
    (w1, b1, w2, b2, w3, b3) = raw
    h1 = jnp.maximum(x @ w1.T + b1, 0.0)
    h2 = jnp.maximum(jnp.concatenate([h1, a], axis=1) @ w2.T + b2, 0.0)
    return h2 @ w3.T + b3


if __name__ == "__main__":
    obs_size, action_size = 16, 4
    l1_size, l2_size = 400, 300

    key = jax.random.PRNGKey(0)
    kp, kx, ka, kx2, ka2 = jax.random.split(key, 5)

    params, raw = init_critic_params(kp, obs_size, action_size, l1_size, l2_size)

    # Small batch: single full-batch grid step.
    x = jax.random.normal(kx, (8, obs_size), jnp.float32)
    a = jax.random.normal(ka, (8, action_size), jnp.float32)
    q = critic_forward(x, a, params)
    jax.block_until_ready(q)
    assert q.shape == (8, 1), q.shape

    # Tight check vs a reference using the identical bf16/f32 mixed math.
    q_mimic = critic_reference_mimic(x, a, params)
    assert jnp.allclose(q, q_mimic, atol=1e-5, rtol=1e-3), (q, q_mimic)

    # Sanity check vs the full-f32 PyTorch-equivalent math (bf16 MXU operands
    # introduce a small, bounded deviation).
    q_f32 = critic_reference_f32(x, a, raw)
    assert jnp.allclose(q, q_f32, atol=2e-4, rtol=5e-2), (q, q_f32)

    # Larger, non-multiple-of-block batch: exercises batch padding and the
    # 2-step "parallel" grid (both v7x TensorCores busy).
    x2 = jax.random.normal(kx2, (600, obs_size), jnp.float32)
    a2 = jax.random.normal(ka2, (600, action_size), jnp.float32)
    q2 = critic_forward(x2, a2, params)
    jax.block_until_ready(q2)
    assert q2.shape == (600, 1), q2.shape
    q2_mimic = critic_reference_mimic(x2, a2, params)
    assert jnp.allclose(q2, q2_mimic, atol=1e-5, rtol=1e-3), (q2, q2_mimic)

    print("KERNEL_OK")
</pallas_src>

<mosaic_0001>
module attributes {stable_mosaic.version = 11 : i64} {
  func.func @_critic_kernel(%arg0: i32, %arg1: memref<8x20xf32, #tpu.memory_space<vmem>>, %arg2: memref<20x512xbf16, #tpu.memory_space<vmem>>, %arg3: memref<1x512xf32, #tpu.memory_space<vmem>>, %arg4: memref<512x384xbf16, #tpu.memory_space<vmem>>, %arg5: memref<1x384xf32, #tpu.memory_space<vmem>>, %arg6: memref<1x384xf32, #tpu.memory_space<vmem>>, %arg7: memref<1x1xf32, #tpu.memory_space<vmem>>, %arg8: memref<8x1xf32, #tpu.memory_space<vmem>>) attributes {dimension_semantics = [#tpu.dimension_semantics<parallel>], iteration_bounds = array<i64: 1>, scalar_prefetch = 0 : i64, scratch_operands = 0 : i64, tpu.core_type = #tpu.core_type<tc>, window_params = [{transform_indices = @transform_0, window_bounds = array<i64: 8, 20>}, {pipeline_mode = #tpu.pipeline_mode<synchronous>, transform_indices = @transform_1, window_bounds = array<i64: 20, 512>}, {pipeline_mode = #tpu.pipeline_mode<synchronous>, transform_indices = @transform_2, window_bounds = array<i64: 1, 512>}, {pipeline_mode = #tpu.pipeline_mode<synchronous>, transform_indices = @transform_3, window_bounds = array<i64: 512, 384>}, {pipeline_mode = #tpu.pipeline_mode<synchronous>, transform_indices = @transform_4, window_bounds = array<i64: 1, 384>}, {pipeline_mode = #tpu.pipeline_mode<synchronous>, transform_indices = @transform_5, window_bounds = array<i64: 1, 384>}, {pipeline_mode = #tpu.pipeline_mode<synchronous>, transform_indices = @transform_6, window_bounds = array<i64: 1, 1>}, {transform_indices = @transform_7, window_bounds = array<i64: 8, 1>}]} {
    %c0 = arith.constant 0 : index
    %c0_0 = arith.constant 0 : index
    %0 = vector.load %arg1[%c0, %c0_0] : memref<8x20xf32, #tpu.memory_space<vmem>>, vector<8x20xf32>
    %1 = arith.truncf %0 : vector<8x20xf32> to vector<8x20xbf16>
    %c0_1 = arith.constant 0 : index
    %c0_2 = arith.constant 0 : index
    %2 = vector.load %arg2[%c0_1, %c0_2] : memref<20x512xbf16, #tpu.memory_space<vmem>>, vector<20x512xbf16>
    %cst = arith.constant dense<0.000000e+00> : vector<8x512xf32>
    %3 = tpu.matmul %1, %2, %cst {dimension_numbers = #tpu.dot_dimension_numbers<[1], [0], [0], [1], [0, 0, 1, 1], [], []>} : vector<8x20xbf16>, vector<20x512xbf16>, vector<8x512xf32> -> vector<8x512xf32>
    %c0_3 = arith.constant 0 : index
    %c0_4 = arith.constant 0 : index
    %4 = vector.load %arg3[%c0_3, %c0_4] : memref<1x512xf32, #tpu.memory_space<vmem>>, vector<1x512xf32>
    %5 = vector.broadcast %4 : vector<1x512xf32> to vector<8x512xf32>
    %6 = arith.addf %3, %5 : vector<8x512xf32>
    %7 = tpu.iota {dimensions = array<i32: 1>} : vector<1x512xi32>
    %c400_i32 = arith.constant 400 : i32
    %8 = vector.broadcast %c400_i32 : i32 to vector<1x512xi32>
    %9 = arith.cmpi slt, %7, %8 : vector<1x512xi32>
    %cst_5 = arith.constant 0.000000e+00 : f32
    %10 = vector.broadcast %cst_5 : f32 to vector<8x512xf32>
    %11 = arith.maximumf %6, %10 : vector<8x512xf32>
    %12 = vector.shape_cast %9 : vector<1x512xi1> to vector<1x512xi1>
    %13 = vector.broadcast %12 : vector<1x512xi1> to vector<8x512xi1>
    %14 = arith.select %13, %11, %6 : vector<8x512xi1>, vector<8x512xf32>
    %15 = arith.truncf %14 : vector<8x512xf32> to vector<8x512xbf16>
    %c0_6 = arith.constant 0 : index
    %c0_7 = arith.constant 0 : index
    %16 = vector.load %arg4[%c0_6, %c0_7] : memref<512x384xbf16, #tpu.memory_space<vmem>>, vector<512x384xbf16>
    %cst_8 = arith.constant dense<0.000000e+00> : vector<8x384xf32>
    %17 = tpu.matmul %15, %16, %cst_8 {dimension_numbers = #tpu.dot_dimension_numbers<[1], [0], [0], [1], [0, 0, 1, 1], [], []>} : vector<8x512xbf16>, vector<512x384xbf16>, vector<8x384xf32> -> vector<8x384xf32>
    %c0_9 = arith.constant 0 : index
    %c0_10 = arith.constant 0 : index
    %18 = vector.load %arg5[%c0_9, %c0_10] : memref<1x384xf32, #tpu.memory_space<vmem>>, vector<1x384xf32>
    %19 = vector.broadcast %18 : vector<1x384xf32> to vector<8x384xf32>
    %20 = arith.addf %17, %19 : vector<8x384xf32>
    %cst_11 = arith.constant 0.000000e+00 : f32
    %21 = vector.broadcast %cst_11 : f32 to vector<8x384xf32>
    %22 = arith.maximumf %20, %21 : vector<8x384xf32>
    %c0_12 = arith.constant 0 : index
    %c0_13 = arith.constant 0 : index
    %23 = vector.load %arg6[%c0_12, %c0_13] : memref<1x384xf32, #tpu.memory_space<vmem>>, vector<1x384xf32>
    %24 = vector.broadcast %23 : vector<1x384xf32> to vector<8x384xf32>
    %25 = arith.mulf %22, %24 : vector<8x384xf32>
    %cst_14 = arith.constant dense<0.000000e+00> : vector<8xf32>
    %26 = vector.multi_reduction <add>, %25, %cst_14 [1] : vector<8x384xf32> to vector<8xf32>
    %27 = vector.shape_cast %26 : vector<8xf32> to vector<8x1xf32>
    %c0_15 = arith.constant 0 : index
    %c0_16 = arith.constant 0 : index
    %28 = vector.load %arg7[%c0_15, %c0_16] : memref<1x1xf32, #tpu.memory_space<vmem>>, vector<1x1xf32>
    %29 = vector.broadcast %28 : vector<1x1xf32> to vector<8x1xf32>
    %30 = arith.addf %27, %29 : vector<8x1xf32>
    %c0_17 = arith.constant 0 : index
    %c0_18 = arith.constant 0 : index
    %31 = vector.load %arg8[%c0_17, %c0_18] : memref<8x1xf32, #tpu.memory_space<vmem>>, vector<8x1xf32>
    tpu.vector_store %arg8[%c0_17, %c0_18], %30 {strides = array<i32>} : memref<8x1xf32, #tpu.memory_space<vmem>>, vector<8x1xf32>,
    return
  }
  func.func @transform_0(%arg0: i32) -> (i32, i32) {
    %c0_i32 = arith.constant 0 : i32
    %c0_i32_0 = arith.constant 0 : i32
    return %arg0, %c0_i32 : i32, i32
  }
  func.func @transform_1(%arg0: i32) -> (i32, i32) {
    %c0_i32 = arith.constant 0 : i32
    %c0_i32_0 = arith.constant 0 : i32
    %c0_i32_1 = arith.constant 0 : i32
    return %c0_i32, %c0_i32_0 : i32, i32
  }
  func.func @transform_2(%arg0: i32) -> (i32, i32) {
    %c0_i32 = arith.constant 0 : i32
    %c0_i32_0 = arith.constant 0 : i32
    %c0_i32_1 = arith.constant 0 : i32
    return %c0_i32, %c0_i32_0 : i32, i32
  }
  func.func @transform_3(%arg0: i32) -> (i32, i32) {
    %c0_i32 = arith.constant 0 : i32
    %c0_i32_0 = arith.constant 0 : i32
    %c0_i32_1 = arith.constant 0 : i32
    return %c0_i32, %c0_i32_0 : i32, i32
  }
  func.func @transform_4(%arg0: i32) -> (i32, i32) {
    %c0_i32 = arith.constant 0 : i32
    %c0_i32_0 = arith.constant 0 : i32
    %c0_i32_1 = arith.constant 0 : i32
    return %c0_i32, %c0_i32_0 : i32, i32
  }
  func.func @transform_5(%arg0: i32) -> (i32, i32) {
    %c0_i32 = arith.constant 0 : i32
    %c0_i32_0 = arith.constant 0 : i32
    %c0_i32_1 = arith.constant 0 : i32
    return %c0_i32, %c0_i32_0 : i32, i32
  }
  func.func @transform_6(%arg0: i32) -> (i32, i32) {
    %c0_i32 = arith.constant 0 : i32
    %c0_i32_0 = arith.constant 0 : i32
    %c0_i32_1 = arith.constant 0 : i32
    return %c0_i32, %c0_i32_0 : i32, i32
  }
  func.func @transform_7(%arg0: i32) -> (i32, i32) {
    %c0_i32 = arith.constant 0 : i32
    %c0_i32_0 = arith.constant 0 : i32
    return %arg0, %c0_i32 : i32, i32
  }
}

</mosaic_0001>

<bundles_post_ra>
// kernel: tpu_custom_call.1
= control target key start
LH: loop header
LB: loop body
LE: loop exit
PB: predicated region body
PF: predicated region fallthrough
CT: control target
= control target key end

     0   :  { %s1576_s0 = inlined_call_operand.hbm [shape: f32[8,20], index: 0, kind: input, shape index: {}]   ;;  %s1577_s1 = inlined_call_operand.hbm [shape: bf16[20,512], index: 1, kind: input, shape index: {}]   ;;  %s1578_s2 = inlined_call_operand.vmem [shape: f32[1,512], index: 2, kind: input, shape index: {}]   ;;  %s1579_s3 = inlined_call_operand.hbm [shape: bf16[512,384], index: 3, kind: input, shape index: {}]   ;;  %s1580_s4 = inlined_call_operand.vmem [shape: f32[1,384], index: 4, kind: input, shape index: {}]   ;;  %s1581_s5 = inlined_call_operand.vmem [shape: f32[1,384], index: 5, kind: input, shape index: {}]   ;;  %s1582_s6 = inlined_call_operand.<no memory space> [shape: f32[1,1], index: 6, kind: input, shape index: {}]   ;;  %s1583_s7 = inlined_call_operand.vmem [shape: f32[8,1], index: 7, kind: output, shape index: {}]  }
   0x1   :  { %v12_v0 = vstv %s1582_s6 }
   0x2   :  { %13 = vst [vmem:[#allocation2] sm:$0x1] %v12_v0 }
   0x3   :  { %14 = vsyncpa [#allocation4], 0 }
   0x4   :  { %15 = vsyncpa [#allocation6], 0  ;;  %s1481_s26 = smov [#allocation5]  }
   0x5   :  { %s31_s27 = sshll.u32 %s1481_s26, 4  ;;  %s32_s27 = int_to_ptr.vmem [resolvable:$true] %s31_s27 }
   0x6   :  { %s1425_s28 = scalar_lea.vmem %s32_s27, 768  ;;  %p1430_p1 = scmp.lt.s32.totalorder %s32_s27, %s32_s27 }
   0x7   :  { %p1426_p0 = scmp.ne.s32.totalorder %s32_s27, %s1425_s28  ;;  %p1431_p2 = scmp.lt.s32.totalorder %s1425_s28, %s1425_s28 }
   0x9   :  { %p1432_p3 = por %p1431_p2, %p1430_p1 }
   0xb   :  { %p1433_p4 = pnand %p1432_p3, %p1426_p0 }
   0xd   :  { %1436 = shalt.err (!%p1433_p4)
}
   0xe   :  { %s1482_s29 = smov 256   ;;  %s1483_s30 = smov 16  }
   0xf   :  { %37 = dma.hbm_to_vmem [thread:$0]  %s1577_s1, 768, %s32_s27, [#allocation6], %s1482_s29, %s1482_s29, %s1483_s30  }
  0x10   :  { %s1484_s6 = smov [#allocation3]   ;;  %s1485_s11 = smov [#allocation7]  }
  0x11   :  { %s22_s10 = sshll.u32 %s1484_s6, 4  ;;  %s45_s12 = sshll.u32 %s1485_s11, 4  ;;  %s23_s10 = int_to_ptr.vmem [resolvable:$true] %s22_s10  ;;  %s46_s12 = int_to_ptr.vmem [resolvable:$true] %s45_s12 }
  0x12   :  { %s1445_s13 = scalar_lea.vmem %s23_s10, 128  ;;  %p1450_p6 = scmp.lt.s32.totalorder %s23_s10, %s23_s10 }
  0x13   :  { %p1446_p5 = scmp.ne.s32.totalorder %s23_s10, %s1445_s13  ;;  %p1451_p7 = scmp.lt.s32.totalorder %s1445_s13, %s1445_s13 }
  0x15   :  { %p1452_p8 = por %p1451_p7, %p1450_p6 }
  0x17   :  { %p1453_p9 = pnand %p1452_p8, %p1446_p5 }
  0x19   :  { %1456 = shalt.err (!%p1453_p9)
}
  0x1a   :  { %25 = dma.hbm_to_vmem [thread:$0]  %s1576_s0, 128, %s23_s10, [#allocation4]  }
  0x1b   :  { %s1465_s16 = scalar_lea.vmem %s46_s12, 12288  ;;  %p1470_p11 = scmp.lt.s32.totalorder %s46_s12, %s46_s12 }
  0x1c   :  { %p1466_p10 = scmp.ne.s32.totalorder %s46_s12, %s1465_s16  ;;  %p1471_p12 = scmp.lt.s32.totalorder %s1465_s16, %s1465_s16 }
  0x1e   :  { %p1472_p13 = por %p1471_p12, %p1470_p11 }
  0x20   :  { %p1473_p0 = pnand %p1472_p13, %p1466_p10 }
  0x22   :  { %1476 = shalt.err (!%p1473_p0)
}
  0x23   :  { %s1486_s1 = smov 192   ;;  %s1487_s17 = smov 12  }
  0x24   :  { %51 = dma.hbm_to_vmem [thread:$0]  %s1579_s3, 12288, %s46_s12, [#allocation6], %s1486_s1, %s1486_s1, %s1487_s17  }
  0x25   :  { %1477 = dma.done.wait [#allocation4], 128  }
  0x26   :  { %1478 = vsyncadd [#allocation4], 4294967168 }
  0x27   :  { %1479 = dma.done.wait [#allocation6], 13056  }
  0x28   :  { %1480 = vsyncadd [#allocation6], 4294954240  ;;  %v1488_v1 = vmov 0   ;;  %v74_v2 = vld [vmem:[#allocation5 + $0x20] sm:$0x33]  ;;  %vm132_vm0 = vcmask 1041408  }
  0x29   :  { %177 = vmatprep.mubr.bf16.mxu0 %v1488_v1  ;;  %218 = vmatprep.mubr.bf16.mxu1 %v1488_v1  ;;  %v75_v3 = vld [vmem:[#allocation5 + $0x28] sm:$0x33]  ;;  %v1123_v4 = vcombine.high %v74_v2, %v74_v2  ;;  %v1122_v6 = vcombine.low %v74_v2, %v74_v2  ;;  %v1283_v8 = vld [vmem:[#allocation5 + $0x4] ss:$16 sps:$4 sm:$0xff]   ;;  %v1287_v12 = vld [vmem:[#allocation5] ss:$16 sps:$4 sm:$0xff]  }
  0x2a   :  { %v1125_v5 = vcombine.high %v75_v3, %v75_v3  ;;  %v1124_v7 = vcombine.low %v75_v3, %v75_v3  ;;  %v1285_v9 = vld [vmem:[#allocation5 + $0xc] ss:$16 sps:$4 sm:$0xff]   ;;  %v1288_v13 = vld [vmem:[#allocation5 + $0x8] ss:$16 sps:$4 sm:$0xff]   ;;  %vm128_vm1 = vcmask 162816   ;;  %vm1110_vm3 = vcmask 7168  }
  0x2b   :  { %1126 = vmatprep.subr.msk.bf16.mxu0 %vm132_vm0, %v1123_v4  ;;  %v134_v10 = vsel %vm132_vm0, %v1122_v6, 0  ;;  %v68_v14 = vld [vmem:[#allocation3] sm:$0xff]  ;;  %v1297_v20 = vld [vmem:[#allocation7 + $0x94] ss:$12 sps:$4 sm:$0xff]   ;;  %v1295_v22 = vld [vmem:[#allocation7 + $0x90] ss:$12 sps:$4 sm:$0xff]  }
  0x2c   :  { %1128 = vmatprep.subr.msk.bf16.mxu1 %vm132_vm0, %v1125_v5  ;;  %v140_v11 = vsel %vm132_vm0, %v1124_v7, 0  ;;  %158 = vmatpush1.bf16.msra.mxu0 %v134_v10  ;;  %v1291_v15 = vld [vmem:[#allocation7 + $0xac] ss:$12 sps:$4 sm:$0xff]   ;;  %v69_v17 = vpack.c.bf16 %v68_v14, %v68_v14  ;;  %v1289_v18 = vld [vmem:[#allocation7 + $0xa8] ss:$12 sps:$4 sm:$0xff]  }
  0x2d   :  { %199 = vmatpush1.bf16.msra.mxu1 %v140_v11  ;;  %159 = vmatprep.subr.bf16.mxu0 %v1283_v8  ;;  %v1294_v16 = vld [vmem:[#allocation7 + $0x22c] ss:$12 sps:$4 sm:$0xff]   ;;  %v1292_v19 = vld [vmem:[#allocation7 + $0x228] ss:$12 sps:$4 sm:$0xff]   ;;  %v1298_v23 = vld [vmem:[#allocation7 + $0x210] ss:$12 sps:$4 sm:$0xff]  }
  0x2e   :  { %200 = vmatprep.subr.bf16.mxu1 %v1285_v9  ;;  %v1300_v21 = vld [vmem:[#allocation7 + $0x214] ss:$12 sps:$4 sm:$0xff]   ;;  %v1303_v24 = vld [vmem:[#allocation7 + $0x7c] ss:$12 sps:$4 sm:$0xff]   ;;  %v1301_v26 = vld [vmem:[#allocation7 + $0x78] ss:$12 sps:$4 sm:$0xff]  }
  0x2f   :  { %v1306_v25 = vld [vmem:[#allocation7 + $0x1fc] ss:$12 sps:$4 sm:$0xff]   ;;  %v1304_v27 = vld [vmem:[#allocation7 + $0x1f8] ss:$12 sps:$4 sm:$0xff]   ;;  %v1307_v30 = vld [vmem:[#allocation7 + $0x60] ss:$12 sps:$4 sm:$0xff]  }
  0x30   :  { %160 = vmatpush1.bf16.msra.mxu0 %v1287_v12  ;;  %v1309_v28 = vld [vmem:[#allocation7 + $0x64] ss:$12 sps:$4 sm:$0xff]   ;;  %v1310_v31 = vld [vmem:[#allocation7 + $0x1e0] ss:$12 sps:$4 sm:$0xff]   ;;  %v1313_v34 = vld [vmem:[#allocation7 + $0x48] ss:$12 sps:$4 sm:$0xff]  }
  0x31   :  { %201 = vmatpush1.bf16.msra.mxu1 %v1288_v13  ;;  %913 = vmatprep.subr.bf16.mxu0 %v1291_v15  ;;  %v1312_v29 = vld [vmem:[#allocation7 + $0x1e4] ss:$12 sps:$4 sm:$0xff]   ;;  %v1315_v32 = vld [vmem:[#allocation7 + $0x4c] ss:$12 sps:$4 sm:$0xff]   ;;  %v1316_v35 = vld [vmem:[#allocation7 + $0x1c8] ss:$12 sps:$4 sm:$0xff]  }
  0x32   :  { %954 = vmatprep.subr.bf16.mxu1 %v1294_v16  ;;  %v1318_v33 = vld [vmem:[#allocation7 + $0x1cc] ss:$12 sps:$4 sm:$0xff]   ;;  %v1321_v36 = vld [vmem:[#allocation7 + $0x34] ss:$12 sps:$4 sm:$0xff]   ;;  %v1319_v38 = vld [vmem:[#allocation7 + $0x30] ss:$12 sps:$4 sm:$0xff]  }
  0x33   :  { %1127 = vmatmul.mubr.msk.bf16.vlgmr.msra.gmra.mxu0 %vm128_vm1, %v69_v17  ;;  %v1324_v37 = vld [vmem:[#allocation7 + $0x1b4] ss:$12 sps:$4 sm:$0xff]   ;;  %v1322_v39 = vld [vmem:[#allocation7 + $0x1b0] ss:$12 sps:$4 sm:$0xff]   ;;  %v1325_v42 = vld [vmem:[#allocation7 + $0x18] ss:$12 sps:$4 sm:$0xff]  }
  0x34   :  { %1129 = vmatmul.mubr.msk.bf16.vlgmr.msra.gmra.mxu1 %vm128_vm1, %v69_v17  ;;  %914 = vmatpush1.bf16.msra.mxu0 %v1289_v18  ;;  %v1327_v40 = vld [vmem:[#allocation7 + $0x1c] ss:$12 sps:$4 sm:$0xff]   ;;  %v1328_v43 = vld [vmem:[#allocation7 + $0x198] ss:$12 sps:$4 sm:$0xff]   ;;  %v1331_v46 = vld [vmem:[#allocation7] ss:$12 sps:$4 sm:$0xff]   ;;  %v78_v18 = vlaneseq }
  0x35   :  { %955 = vmatpush1.bf16.msra.mxu1 %v1292_v19  ;;  %915 = vmatprep.subr.bf16.mxu0 %v1297_v20  ;;  %v1330_v41 = vld [vmem:[#allocation7 + $0x19c] ss:$12 sps:$4 sm:$0xff]   ;;  %v1333_v44 = vld [vmem:[#allocation7 + $0x4] ss:$12 sps:$4 sm:$0xff]   ;;  %v1334_v47 = vld [vmem:[#allocation7 + $0x180] ss:$12 sps:$4 sm:$0xff]  }
  0x36   :  { %956 = vmatprep.subr.bf16.mxu1 %v1300_v21  ;;  %v1336_v45 = vld [vmem:[#allocation7 + $0x184] ss:$12 sps:$4 sm:$0xff]   ;;  %v1339_v48 = vld [vmem:[#allocation7 + $0x16c] ss:$12 sps:$4 sm:$0xff]   ;;  %v1337_v50 = vld [vmem:[#allocation7 + $0x168] ss:$12 sps:$4 sm:$0xff]  }
  0x37   :  { %v1342_v49 = vld [vmem:[#allocation7 + $0x2ec] ss:$12 sps:$4 sm:$0xff]   ;;  %v1340_v51 = vld [vmem:[#allocation7 + $0x2e8] ss:$12 sps:$4 sm:$0xff]   ;;  %v1343_v54 = vld [vmem:[#allocation7 + $0x150] ss:$12 sps:$4 sm:$0xff]  }
  0x38   :  { %916 = vmatpush1.bf16.msra.mxu0 %v1295_v22  ;;  %v1345_v52 = vld [vmem:[#allocation7 + $0x154] ss:$12 sps:$4 sm:$0xff]   ;;  %v1346_v55 = vld [vmem:[#allocation7 + $0x2d0] ss:$12 sps:$4 sm:$0xff]   ;;  %v1349_v58 = vld [vmem:[#allocation7 + $0x138] ss:$12 sps:$4 sm:$0xff]  }
  0x39   :  { %957 = vmatpush1.bf16.msra.mxu1 %v1298_v23  ;;  %917 = vmatprep.subr.bf16.mxu0 %v1303_v24  ;;  %v1348_v53 = vld [vmem:[#allocation7 + $0x2d4] ss:$12 sps:$4 sm:$0xff]   ;;  %v1351_v56 = vld [vmem:[#allocation7 + $0x13c] ss:$12 sps:$4 sm:$0xff]   ;;  %v1352_v59 = vld [vmem:[#allocation7 + $0x2b8] ss:$12 sps:$4 sm:$0xff]  }
  0x3a   :  { %958 = vmatprep.subr.bf16.mxu1 %v1306_v25  ;;  %v1354_v57 = vld [vmem:[#allocation7 + $0x2bc] ss:$12 sps:$4 sm:$0xff]   ;;  %v1357_v60 = vld [vmem:[#allocation7 + $0x124] ss:$12 sps:$4 sm:$0xff]   ;;  %v1355_v62 = vld [vmem:[#allocation7 + $0x120] ss:$12 sps:$4 sm:$0xff]  }
  0x3b   :  { %v1360_v61 = vld [vmem:[#allocation7 + $0x2a4] ss:$12 sps:$4 sm:$0xff]   ;;  %v1358_v63 = vld [vmem:[#allocation7 + $0x2a0] ss:$12 sps:$4 sm:$0xff]   ;;  %v1361_v2 = vld [vmem:[#allocation7 + $0x108] ss:$12 sps:$4 sm:$0xff]  }
  0x3c   :  { %918 = vmatpush1.bf16.msra.mxu0 %v1301_v26  ;;  %v1363_v0 = vld [vmem:[#allocation7 + $0x10c] ss:$12 sps:$4 sm:$0xff]   ;;  %v1364_v3 = vld [vmem:[#allocation7 + $0x288] ss:$12 sps:$4 sm:$0xff]   ;;  %v1367_v6 = vld [vmem:[#allocation7 + $0xf0] ss:$12 sps:$4 sm:$0xff]  }
  0x3d   :  { %959 = vmatpush1.bf16.msra.mxu1 %v1304_v27  ;;  %919 = vmatprep.subr.bf16.mxu0 %v1309_v28  ;;  %v1366_v1 = vld [vmem:[#allocation7 + $0x28c] ss:$12 sps:$4 sm:$0xff]   ;;  %v1369_v4 = vld [vmem:[#allocation7 + $0xf4] ss:$12 sps:$4 sm:$0xff]   ;;  %v1370_v7 = vld [vmem:[#allocation7 + $0x270] ss:$12 sps:$4 sm:$0xff]  }
  0x3e   :  { %960 = vmatprep.subr.bf16.mxu1 %v1312_v29  ;;  %v1372_v5 = vld [vmem:[#allocation7 + $0x274] ss:$12 sps:$4 sm:$0xff]   ;;  %v1375_v8 = vld [vmem:[#allocation7 + $0xdc] ss:$12 sps:$4 sm:$0xff]   ;;  %v1373_v9 = vld [vmem:[#allocation7 + $0xd8] ss:$12 sps:$4 sm:$0xff]  }
  0x3f   :  { %v1378_v10 = vld [vmem:[#allocation7 + $0x25c] ss:$12 sps:$4 sm:$0xff]   ;;  %v1376_v11 = vld [vmem:[#allocation7 + $0x258] ss:$12 sps:$4 sm:$0xff]   ;;  %v1379_v13 = vld [vmem:[#allocation7 + $0xc0] ss:$12 sps:$4 sm:$0xff]  }
  0x40   :  { %920 = vmatpush1.bf16.msra.mxu0 %v1307_v30  ;;  %v1381_v12 = vld [vmem:[#allocation7 + $0xc4] ss:$12 sps:$4 sm:$0xff]   ;;  %v1382_v15 = vld [vmem:[#allocation7 + $0x240] ss:$12 sps:$4 sm:$0xff]   ;;  %v79_v19 = vshrl.u32 %v78_v18, 7  ;;  %v228_v25 = vand.u32 127, %v78_v18 }
  0x41   :  { %961 = vmatpush1.bf16.msra.mxu1 %v1310_v31  ;;  %921 = vmatprep.subr.bf16.mxu0 %v1315_v32  ;;  %v1384_v14 = vld [vmem:[#allocation7 + $0x244] ss:$12 sps:$4 sm:$0xff]  }
  0x42   :  { %962 = vmatprep.subr.bf16.mxu1 %v1318_v33  ;;  %v1385_v16 = vld [vmem:[#allocation7 + $0x170] ss:$12 sps:$4 sm:$0xff]   ;;  %v1541_v20 = vsub.s32 0, %v79_v19  ;;  %v1543_v21 = vsub.s32 2, %v79_v19  ;;  %v76_v22 = vld [vmem:[%s1578_s2] sm:$0xf] }
  0x43   :  { %v1387_v17 = vld [vmem:[#allocation7 + $0x2f0] ss:$12 sps:$4 sm:$0xff]   ;;  %v1548_v23 = vsub.s32 1, %v79_v19  ;;  %v92_v24 = vsub.s32 3, %v79_v19  ;;  %v231_v32 = vadd.s32 384, %v228_v25 }
  0x44   :  { %922 = vmatpush1.bf16.msra.mxu0 %v1313_v34  ;;  %v81_v26 = vrot.slane %v76_v22, %v1541_v20  ;;  %v89_v27 = vrot.slane %v76_v22, %v1543_v21 }
  0x45   :  { %963 = vmatpush1.bf16.msra.mxu1 %v1316_v35  ;;  %923 = vmatprep.subr.bf16.mxu0 %v1321_v36  ;;  %v85_v28 = vrot.slane %v76_v22, %v1548_v23  ;;  %v93_v29 = vrot.slane %v76_v22, %v92_v24  ;;  %vm235_vm2 = vcmp.lt.s32.totalorder %v231_v32, 400 }
  0x46   :  { %964 = vmatprep.subr.bf16.mxu1 %v1324_v37 }
  0x48   :  { %924 = vmatpush1.bf16.msra.mxu0 %v1319_v38 }
  0x49   :  { %965 = vmatpush1.bf16.msra.mxu1 %v1322_v39  ;;  %925 = vmatprep.subr.bf16.mxu0 %v1327_v40 }
  0x4a   :  { %966 = vmatprep.subr.bf16.mxu1 %v1330_v41 }
  0x4c   :  { %926 = vmatpush1.bf16.msra.mxu0 %v1325_v42 }
  0x4d   :  { %967 = vmatpush1.bf16.msra.mxu1 %v1328_v43  ;;  %927 = vmatprep.subr.bf16.mxu0 %v1333_v44 }
  0x4e   :  { %968 = vmatprep.subr.bf16.mxu1 %v1336_v45 }
  0x50   :  { %928 = vmatpush1.bf16.msra.mxu0 %v1331_v46 }
  0x51   :  { %969 = vmatpush1.bf16.msra.mxu1 %v1334_v47  ;;  %929 = vmatprep.subr.bf16.mxu0 %v1339_v48 }
  0x52   :  { %970 = vmatprep.subr.bf16.mxu1 %v1342_v49  ;;  %v1386_v49 = vld [vmem:[#allocation7 + $0xb0] ss:$12 sps:$4 sm:$0xff]  }
  0x54   :  { %930 = vmatpush2.bf16.msra.mxu0 %v1337_v50 }
  0x55   :  { %971 = vmatpush2.bf16.msra.mxu1 %v1340_v51  ;;  %931 = vmatprep.subr.bf16.mxu0 %v1345_v52  ;;  %v1388_v52 = vld [vmem:[#allocation7 + $0x230] ss:$12 sps:$4 sm:$0xff]  }
  0x56   :  { %972 = vmatprep.subr.bf16.mxu1 %v1348_v53 }
  0x58   :  { %932 = vmatpush2.bf16.msra.mxu0 %v1343_v54  ;;  %v1389_v54 = vld [vmem:[#allocation7 + $0x158] ss:$12 sps:$4 sm:$0xff]  }
  0x59   :  { %973 = vmatpush2.bf16.msra.mxu1 %v1346_v55  ;;  %933 = vmatprep.subr.bf16.mxu0 %v1351_v56  ;;  %v1391_v55 = vld [vmem:[#allocation7 + $0x2d8] ss:$12 sps:$4 sm:$0xff]  }
  0x5a   :  { %974 = vmatprep.subr.bf16.mxu1 %v1354_v57  ;;  %v1390_v56 = vld [vmem:[#allocation7 + $0x98] ss:$12 sps:$4 sm:$0xff]  }
  0x5b   :  { %v1392_v57 = vld [vmem:[#allocation7 + $0x218] ss:$12 sps:$4 sm:$0xff]  }
  0x5c   :  { %934 = vmatpush2.bf16.msra.mxu0 %v1349_v58  ;;  %v1393_v58 = vld [vmem:[#allocation7 + $0x140] ss:$12 sps:$4 sm:$0xff]  }
  0x5d   :  { %975 = vmatpush2.bf16.msra.mxu1 %v1352_v59  ;;  %935 = vmatprep.subr.bf16.mxu0 %v1357_v60  ;;  %v1395_v59 = vld [vmem:[#allocation7 + $0x2c0] ss:$12 sps:$4 sm:$0xff]  }
  0x5e   :  { %976 = vmatprep.subr.bf16.mxu1 %v1360_v61  ;;  %v1394_v60 = vld [vmem:[#allocation7 + $0x80] ss:$12 sps:$4 sm:$0xff]  }
  0x5f   :  { %v1396_v61 = vld [vmem:[#allocation7 + $0x200] ss:$12 sps:$4 sm:$0xff]  }
  0x60   :  { %936 = vmatpush2.bf16.msra.mxu0 %v1355_v62  ;;  %v1397_v62 = vld [vmem:[#allocation7 + $0x128] ss:$12 sps:$4 sm:$0xff]  }
  0x61   :  { %977 = vmatpush2.bf16.msra.mxu1 %v1358_v63  ;;  %937 = vmatprep.subr.bf16.mxu0 %v1363_v0  ;;  %v1399_v63 = vld [vmem:[#allocation7 + $0x2a8] ss:$12 sps:$4 sm:$0xff]  }
  0x62   :  { %978 = vmatprep.subr.bf16.mxu1 %v1366_v1  ;;  %v1398_v0 = vld [vmem:[#allocation7 + $0x68] ss:$12 sps:$4 sm:$0xff]  }
  0x63   :  { %v1400_v1 = vld [vmem:[#allocation7 + $0x1e8] ss:$12 sps:$4 sm:$0xff]  }
  0x64   :  { %938 = vmatpush2.bf16.msra.mxu0 %v1361_v2  ;;  %v1401_v2 = vld [vmem:[#allocation7 + $0x110] ss:$12 sps:$4 sm:$0xff]  }
  0x65   :  { %979 = vmatpush2.bf16.msra.mxu1 %v1364_v3  ;;  %939 = vmatprep.subr.bf16.mxu0 %v1369_v4  ;;  %v1403_v3 = vld [vmem:[#allocation7 + $0x290] ss:$12 sps:$4 sm:$0xff]  }
  0x66   :  { %980 = vmatprep.subr.bf16.mxu1 %v1372_v5  ;;  %v1402_v4 = vld [vmem:[#allocation7 + $0x50] ss:$12 sps:$4 sm:$0xff]  }
  0x67   :  { %v1404_v5 = vld [vmem:[#allocation7 + $0x1d0] ss:$12 sps:$4 sm:$0xff]  }
  0x68   :  { %940 = vmatpush2.bf16.msra.mxu0 %v1367_v6  ;;  %v1405_v6 = vld [vmem:[#allocation7 + $0xf8] ss:$12 sps:$4 sm:$0xff]  }
  0x69   :  { %981 = vmatpush2.bf16.msra.mxu1 %v1370_v7  ;;  %941 = vmatprep.subr.bf16.mxu0 %v1375_v8  ;;  %v1407_v7 = vld [vmem:[#allocation7 + $0x278] ss:$12 sps:$4 sm:$0xff]  }
  0x6a   :  { %982 = vmatprep.subr.bf16.mxu1 %v1378_v10  ;;  %v1406_v8 = vld [vmem:[#allocation7 + $0x38] ss:$12 sps:$4 sm:$0xff]   ;;  %v1409_v10 = vld [vmem:[#allocation7 + $0xe0] ss:$12 sps:$4 sm:$0xff]  }
  0x6c   :  { %942 = vmatpush2.bf16.msra.mxu0 %v1373_v9  ;;  %v1408_v9 = vld [vmem:[#allocation7 + $0x1b8] ss:$12 sps:$4 sm:$0xff]  }
  0x6d   :  { %983 = vmatpush2.bf16.msra.mxu1 %v1376_v11  ;;  %943 = vmatprep.subr.bf16.mxu0 %v1381_v12  ;;  %v1411_v11 = vld [vmem:[#allocation7 + $0x260] ss:$12 sps:$4 sm:$0xff]  }
  0x6e   :  { %984 = vmatprep.subr.bf16.mxu1 %v1384_v14  ;;  %v1410_v12 = vld [vmem:[#allocation7 + $0x20] ss:$12 sps:$4 sm:$0xff]   ;;  %v1413_v14 = vld [vmem:[#allocation7 + $0xc8] ss:$12 sps:$4 sm:$0xff]  }
  0x70   :  { %944 = vmatpush2.bf16.msra.mxu0 %v1379_v13  ;;  %v1412_v13 = vld [vmem:[#allocation7 + $0x1a0] ss:$12 sps:$4 sm:$0xff]  }
  0x71   :  { %985 = vmatpush2.bf16.msra.mxu1 %v1382_v15  ;;  %1227 = vmatprep.subr.bf16.mxu0 %v1385_v16  ;;  %v1415_v15 = vld [vmem:[#allocation7 + $0x248] ss:$12 sps:$4 sm:$0xff]  }
  0x72   :  { %1249 = vmatprep.subr.bf16.mxu1 %v1387_v17  ;;  %v1414_v16 = vld [vmem:[#allocation7 + $0x8] ss:$12 sps:$4 sm:$0xff]  }
  0x73   :  { %v1416_v17 = vld [vmem:[#allocation7 + $0x188] ss:$12 sps:$4 sm:$0xff]  }
  0xf3   :  { %v179_v30 = vpop.f32.mrf.mxu0 }
  0xf4   :  { %v220_v31 = vpop.f32.mrf.mxu1  ;;  %v180_v33 = vadd.f32 %v179_v30, %v81_v26 }
  0xf5   :  { %v221_v34 = vadd.f32 %v220_v31, %v89_v27  ;;  %v181_v35 = vpop.f32.mrf.mxu0 }
  0xf6   :  { %v222_v36 = vpop.f32.mrf.mxu1  ;;  %v182_v37 = vadd.f32 %v181_v35, %v85_v28  ;;  %v236_v39 = vmax.f32 %v180_v33, 0.0 }
  0xf7   :  { %v223_v38 = vadd.f32 %v222_v36, %v93_v29  ;;  %v183_v40 = vpop.f32.mrf.mxu0  ;;  %v238_v42 = vmax.f32 %v221_v34, 0.0  ;;  %v384_v29 = vld [vmem:[%s1580_s4] sm:$0x7] }
  0xf8   :  { %v224_v41 = vpop.f32.mrf.mxu1  ;;  %v237_v43 = vmax.f32 %v182_v37, 0.0  ;;  %v1553_v50 = vpack.c.bf16 %v236_v39, %v236_v39  ;;  %v393_v30 = vrot.slane %v384_v29, %v1548_v23  ;;  %v389_v31 = vrot.slane %v384_v29, %v1541_v20  ;;  %v1078_v39 = vld [vmem:[%s1581_s5] sm:$0x7] }
  0xf9   :  { %v239_v44 = vmax.f32 %v223_v38, 0.0  ;;  %v184_v45 = vpop.f32.mrf.mxu0  ;;  %v1555_v53 = vpack.c.bf16 %v238_v42, %v238_v42  ;;  %v1087_v42 = vrot.slane %v1078_v39, %v1548_v23 }
  0xfa   :  { %v225_v46 = vpop.f32.mrf.mxu1  ;;  %v253_v47 = vpack.c.bf16 %v237_v43, %v237_v43 }
  0xfb   :  { %v251_v48 = vsel %vm235_vm2, %v239_v44, %v223_v38  ;;  %v397_v38 = vrot.slane %v384_v29, %v1543_v21 }
  0xfc   :  { %v255_v51 = vpack.c.bf16 %v251_v48, %v251_v48  ;;  %945 = vmatprep.mubr.bf16.mxu0 %v253_v47  ;;  %v1083_v48 = vrot.slane %v1078_v39, %v1541_v20 }
  0xfd   :  { %946 = vmatmul.mubr.bf16.vlgmr.msra.gmra.mxu0 %v1553_v50 }
  0xfe   :  { %986 = vmatprep.mubr.bf16.mxu1 %v255_v51  ;;  %1228 = vmatpush3.bf16.msra.mxu0 %v1386_v49 }
  0xff   :  { %987 = vmatmul.mubr.bf16.vlgmr.msra.gmra.mxu1 %v1555_v53  ;;  %1027 = vmatprep.mubr.bf16.mxu0 %v253_v47 }
 0x100   :  { %1250 = vmatpush3.bf16.msra.mxu1 %v1388_v52  ;;  %1067 = vmatprep.mubr.bf16.mxu1 %v255_v51 }
 0x101   :  { %1229 = vmatprep.subr.bf16.mxu0 %v1389_v54  ;;  %1251 = vmatprep.subr.bf16.mxu1 %v1391_v55  ;;  %v1091_v55 = vrot.slane %v1078_v39, %v1543_v21 }
 0x102   :  { %1230 = vmatpush3.bf16.msra.mxu0 %v1390_v56 }
 0x103   :  { %1231 = vmatprep.subr.bf16.mxu0 %v1393_v58 }
 0x104   :  { %1252 = vmatpush3.bf16.msra.mxu1 %v1392_v57 }
 0x105   :  { %1253 = vmatprep.subr.bf16.mxu1 %v1395_v59 }
 0x106   :  { %1232 = vmatpush3.bf16.msra.mxu0 %v1394_v60  ;;  %v1226_v60 = vld [vmem:[#allocation2] ss:$0 sm:$0xff] }
 0x107   :  { %1233 = vmatprep.subr.bf16.mxu0 %v1397_v62 }
 0x108   :  { %1254 = vmatpush3.bf16.msra.mxu1 %v1396_v61 }
 0x109   :  { %1255 = vmatprep.subr.bf16.mxu1 %v1399_v63 }
 0x10a   :  { %1234 = vmatpush3.bf16.msra.mxu0 %v1398_v0 }
 0x10b   :  { %1235 = vmatprep.subr.bf16.mxu0 %v1401_v2 }
 0x10c   :  { %1256 = vmatpush3.bf16.msra.mxu1 %v1400_v1 }
 0x10d   :  { %1257 = vmatprep.subr.bf16.mxu1 %v1403_v3 }
 0x10e   :  { %1236 = vmatpush3.bf16.msra.mxu0 %v1402_v4 }
 0x10f   :  { %1237 = vmatprep.subr.bf16.mxu0 %v1405_v6 }
 0x110   :  { %1258 = vmatpush3.bf16.msra.mxu1 %v1404_v5 }
 0x111   :  { %1259 = vmatprep.subr.bf16.mxu1 %v1407_v7 }
 0x112   :  { %1238 = vmatpush3.bf16.msra.mxu0 %v1406_v8 }
 0x113   :  { %1239 = vmatprep.subr.bf16.mxu0 %v1409_v10 }
 0x114   :  { %1260 = vmatpush3.bf16.msra.mxu1 %v1408_v9 }
 0x115   :  { %1261 = vmatprep.subr.bf16.mxu1 %v1411_v11 }
 0x116   :  { %1240 = vmatpush3.bf16.msra.mxu0 %v1410_v12 }
 0x117   :  { %1241 = vmatprep.subr.bf16.mxu0 %v1413_v14 }
 0x118   :  { %1262 = vmatpush3.bf16.msra.mxu1 %v1412_v13 }
 0x119   :  { %1263 = vmatprep.subr.bf16.mxu1 %v1415_v15 }
 0x11a   :  { %1242 = vmatpush3.bf16.msra.mxu0 %v1414_v16 }
 0x11c   :  { %1264 = vmatpush3.bf16.msra.mxu1 %v1416_v17 }
 0x11d   :  { %1028 = vmatmul.mubr.bf16.vlgmr.msra.gmra.mxu0 %v1553_v50 }
 0x11f   :  { %1068 = vmatmul.mubr.bf16.vlgmr.msra.gmra.mxu1 %v1555_v53 }
 0x1bd   :  { %v947_v18 = vpop.f32.mrf.mxu0 }
 0x1be   :  { %v948_v33 = vadd.f32 %v947_v18, %v389_v31 }
 0x1bf   :  { %v988_v19 = vpop.f32.mrf.mxu1  ;;  %v949_v22 = vpop.f32.mrf.mxu0 }
 0x1c0   :  { %v950_v32 = vadd.f32 %v949_v22, %v393_v30  ;;  %v989_v36 = vadd.f32 %v988_v19, %v948_v33 }
 0x1c1   :  { %v990_v24 = vpop.f32.mrf.mxu1  ;;  %v951_v25 = vpop.f32.mrf.mxu0 }
 0x1c2   :  { %v991_v34 = vadd.f32 %v990_v24, %v950_v32  ;;  %v1075_v47 = vmax.f32 %v989_v36, 0.0 }
 0x1c3   :  { %v992_v26 = vpop.f32.mrf.mxu1  ;;  %v952_v27 = vpop.f32.mrf.mxu0 }
 0x1c4   :  { %v1076_v41 = vmax.f32 %v991_v34, 0.0  ;;  %v1095_v56 = vmul.f32 %v1083_v48, %v1075_v47 }
 0x1c5   :  { %v993_v28 = vpop.f32.mrf.mxu1 }
 0x1c6   :  { %v1096_v52 = vmul.f32 %v1087_v42, %v1076_v41 }
 0x1c8   :  { %v1098_v59 = vadd.f32 %v1096_v52, %v1095_v56 }
 0x1dd   :  { %v1243_v35 = vpop.f32.mrf.mxu0 }
 0x1df   :  { %v1265_v37 = vpop.f32.mrf.mxu1  ;;  %v1244_v40 = vpop.f32.mrf.mxu0 }
 0x1e0   :  { %v1245_v43 = vadd.f32 %v1244_v40, %v1243_v35 }
 0x1e1   :  { %v1266_v44 = vpop.f32.mrf.mxu1  ;;  %v1246_v46 = vpop.f32.mrf.mxu0 }
 0x1e2   :  { %v1267_v45 = vadd.f32 %v1266_v44, %v1265_v37  ;;  %v1030_v49 = vadd.f32 %v1245_v43, %v397_v38 }
 0x1e3   :  { %v1268_v50 = vpop.f32.mrf.mxu1  ;;  %v1247_v51 = vpop.f32.mrf.mxu0 }
 0x1e4   :  { %v1070_v53 = vadd.f32 %v1267_v45, %v1030_v49 }
 0x1e5   :  { %v1269_v54 = vpop.f32.mrf.mxu1 }
 0x1e6   :  { %v1077_v57 = vmax.f32 %v1070_v53, 0.0 }
 0x1e8   :  { %v1097_v58 = vmul.f32 %v1091_v55, %v1077_v57 }
 0x1ea   :  { %v1099_v23 = vadd.f32 %v1098_v59, %v1097_v58 }
 0x1ec   :  { %1100 = vadd.xlane.f32.xlu0 %v1099_v23 }
 0x275   :  { %v1101_v61 = vpop.xlane.xlu0 %1100 }
 0x276   :  { %v1109_v62 = vadd.f32 %v1226_v60, %v1101_v61 }
 0x278   :  { %1111 = vst.msk [vmem:[%s1583_s7] sm:$0xff] %vm1110_vm3, %v1109_v62 }
 0x279   :  { %1116 = vsyncpa [#allocation4], 1 }
 0x27a   :  { %1117 = vsyncpa [#allocation6], 1 }

</bundles_post_ra>
